<compile_context>
chip_gen: v7x
topology: tpu7x:2x2x1
jax: 0.10.0
libtpu: 0.0.40
codegen_flags: <defaults>
</compile_context>

<pallas_src>
import functools

import jax
import jax.numpy as jnp
from jax.experimental import pallas as pl
from jax.experimental.pallas import tpu as pltpu


def _actnorm_kernel(x_ref, scale_ref, bias_ref, y_ref):
    # x_ref:     (row_blk, lane_blk)   input tile (lane-dense spatial axis)
    # scale_ref: (row_blk, 1) float32  per-row scale (broadcast along lanes)
    # bias_ref:  (row_blk, 1) float32  per-row bias
    y_ref[...] = (scale_ref[...] * (x_ref[...] + bias_ref[...])).astype(y_ref.dtype)


def _largest_divisor_block(dim: int, align: int, max_block: int) -> int:
    """Largest multiple of `align` that divides `dim` and is <= max_block.

    Falls back to the full extent when `dim` is not `align`-aligned (allowed
    because a block equal to the full array dim bypasses the (8,128) rule).
    """
    if dim % align != 0:
        return dim
    blk = min(dim, max(align, (max_block // align) * align))
    while dim % blk != 0:
        blk -= align
    return blk


@functools.partial(jax.jit, static_argnames=("eps", "target_block_bytes"))
def actnorm_forward(x_nchw, raw_scale, bias, *, eps=1e-8, target_block_bytes=2 << 20):
    """ActNorm forward (scale_fn='exp'). x_nchw: (N, C, H, W) -> (y, logdet (N,))."""
    N, C, H, W = x_nchw.shape
    HW = H * W
    rows = N * C

    # O(C) parameter math once in the wrapper (EUP transcendentals + reduction).
    scale = jnp.exp(raw_scale.astype(jnp.float32)) + eps            # (C,)
    logdet = jnp.full((N,), HW * jnp.sum(jnp.log(scale)), dtype=jnp.float32)

    # Free reshape: (N, C, H, W) -> (N*C, HW).  Row r = n*C + c.
    x2d = x_nchw.reshape(rows, HW)
    scale_rows = jnp.tile(scale, N).reshape(rows, 1)                 # (N*C, 1)
    bias_rows = jnp.tile(bias.astype(jnp.float32), N).reshape(rows, 1)

    itemsize = x2d.dtype.itemsize
    # Lanes first: up to 4096 lanes per tile (or whatever the byte budget allows).
    lane_cap = max(128, target_block_bytes // max(1, 8 * itemsize))
    lane_blk = _largest_divisor_block(HW, 128, min(lane_cap, 4096))
    # Rows next: fill the remaining byte budget.
    row_cap = max(8, target_block_bytes // max(1, lane_blk * itemsize))
    row_blk = _largest_divisor_block(rows, 8, row_cap)

    grid = (pl.cdiv(rows, row_blk), pl.cdiv(HW, lane_blk))

    y2d = pl.pallas_call(
        _actnorm_kernel,
        out_shape=jax.ShapeDtypeStruct((rows, HW), x2d.dtype),
        grid_spec=pltpu.PrefetchScalarGridSpec(
            num_scalar_prefetch=0,
            grid=grid,
            in_specs=[
                pl.BlockSpec((row_blk, lane_blk), lambda i, j: (i, j)),
                pl.BlockSpec((row_blk, 1), lambda i, j: (i, 0)),
                pl.BlockSpec((row_blk, 1), lambda i, j: (i, 0)),
            ],
            out_specs=pl.BlockSpec((row_blk, lane_blk), lambda i, j: (i, j)),
        ),
        compiler_params=pltpu.CompilerParams(
            # Pure elementwise pass: both grid axes are independent.
            dimension_semantics=("parallel", "parallel"),
        ),
    )(x2d, scale_rows, bias_rows)

    # Free reshape back to NCHW.
    return y2d.reshape(N, C, H, W), logdet


def actnorm_reference(x_nchw, raw_scale, bias, *, eps=1e-8):
    """Plain-JAX reference matching the PyTorch module (scale_fn='exp')."""
    N, C, H, W = x_nchw.shape
    scale = jnp.exp(raw_scale) + eps                     # (C,)
    logdet_px = jnp.sum(jnp.log(scale))
    scale_b = scale.reshape(1, C, 1, 1)
    bias_b = bias.reshape(1, C, 1, 1)
    y = scale_b * (x_nchw + bias_b)
    logdet = jnp.full((N,), (H * W) * logdet_px, dtype=jnp.float32)
    return y, logdet


if __name__ == "__main__":
    key = jax.random.PRNGKey(0)
    kx, ks, kb = jax.random.split(key, 3)

    N, C, H, W = 2, 4, 16, 16
    x = jax.random.normal(kx, (N, C, H, W), dtype=jnp.float32)
    # Deterministic "trained" parameters (the module would hold these after its
    # data-dependent init; here we just draw them deterministically).
    raw_scale = 0.1 * jax.random.normal(ks, (C,), dtype=jnp.float32)
    bias = 0.1 * jax.random.normal(kb, (C,), dtype=jnp.float32)

    y, logdet = actnorm_forward(x, raw_scale, bias)
    y = jax.block_until_ready(y)
    logdet = jax.block_until_ready(logdet)

    y_ref, logdet_ref = actnorm_reference(x, raw_scale, bias)

    assert jnp.allclose(y, y_ref, atol=1e-5, rtol=1e-5), "y mismatch"
    assert jnp.allclose(logdet, logdet_ref, atol=1e-4, rtol=1e-5), "logdet mismatch"

    # TODO(synk): data-dependent initialization (initialize_this_forward) and the
    # invert() path are stateful / separate ops and are not part of this forward kernel.
    print("KERNEL_OK")
</pallas_src>

<mosaic_0001>
module attributes {stable_mosaic.version = 11 : i64} {
  func.func @_actnorm_kernel(%arg0: i32, %arg1: i32, %arg2: memref<8x256xf32, #tpu.memory_space<vmem>>, %arg3: memref<8x1xf32, #tpu.memory_space<vmem>>, %arg4: memref<8x1xf32, #tpu.memory_space<vmem>>, %arg5: memref<8x256xf32, #tpu.memory_space<vmem>>) attributes {dimension_semantics = [#tpu.dimension_semantics<parallel>, #tpu.dimension_semantics<parallel>], iteration_bounds = array<i64: 1, 1>, scalar_prefetch = 0 : i64, scratch_operands = 0 : i64, tpu.core_type = #tpu.core_type<tc>, window_params = [{transform_indices = @transform_0, window_bounds = array<i64: 8, 256>}, {transform_indices = @transform_1, window_bounds = array<i64: 8, 1>}, {transform_indices = @transform_2, window_bounds = array<i64: 8, 1>}, {transform_indices = @transform_3, window_bounds = array<i64: 8, 256>}]} {
    %c0 = arith.constant 0 : index
    %c0_0 = arith.constant 0 : index
    %0 = vector.load %arg3[%c0, %c0_0] : memref<8x1xf32, #tpu.memory_space<vmem>>, vector<8x1xf32>
    %c0_1 = arith.constant 0 : index
    %c0_2 = arith.constant 0 : index
    %1 = vector.load %arg2[%c0_1, %c0_2] : memref<8x256xf32, #tpu.memory_space<vmem>>, vector<8x256xf32>
    %c0_3 = arith.constant 0 : index
    %c0_4 = arith.constant 0 : index
    %2 = vector.load %arg4[%c0_3, %c0_4] : memref<8x1xf32, #tpu.memory_space<vmem>>, vector<8x1xf32>
    %3 = vector.broadcast %2 : vector<8x1xf32> to vector<8x256xf32>
    %4 = arith.addf %1, %3 : vector<8x256xf32>
    %5 = vector.broadcast %0 : vector<8x1xf32> to vector<8x256xf32>
    %6 = arith.mulf %5, %4 : vector<8x256xf32>
    %c0_5 = arith.constant 0 : index
    %c0_6 = arith.constant 0 : index
    %7 = vector.load %arg5[%c0_5, %c0_6] : memref<8x256xf32, #tpu.memory_space<vmem>>, vector<8x256xf32>
    tpu.vector_store %arg5[%c0_5, %c0_6], %6 {strides = array<i32>} : memref<8x256xf32, #tpu.memory_space<vmem>>, vector<8x256xf32>,
    return
  }
  func.func @transform_0(%arg0: i32, %arg1: i32) -> (i32, i32) {
    %c0_i32 = arith.constant 0 : i32
    return %arg0, %arg1 : i32, i32
  }
  func.func @transform_1(%arg0: i32, %arg1: i32) -> (i32, i32) {
    %c0_i32 = arith.constant 0 : i32
    %c0_i32_0 = arith.constant 0 : i32
    return %arg0, %c0_i32 : i32, i32
  }
  func.func @transform_2(%arg0: i32, %arg1: i32) -> (i32, i32) {
    %c0_i32 = arith.constant 0 : i32
    %c0_i32_0 = arith.constant 0 : i32
    return %arg0, %c0_i32 : i32, i32
  }
  func.func @transform_3(%arg0: i32, %arg1: i32) -> (i32, i32) {
    %c0_i32 = arith.constant 0 : i32
    return %arg0, %arg1 : i32, i32
  }
}

</mosaic_0001>

<bundles_post_ra>
// kernel: tile.0
= control target key start
LH: loop header
LB: loop body
LE: loop exit
PB: predicated region body
PF: predicated region fallthrough
CT: control target
= control target key end

     0   :  { %s34_s8 = smov 125   ;;  %vm7_vm0 = vcmask 7168   ;;  %s35_s11 = smov 126   ;;  %s61_s0 = inlined_call_operand.vmem [shape: f32[2,4], index: 0, kind: input, shape index: {}]   ;;  %s62_s1 = inlined_call_operand.vmem [shape: f32[8,1], index: 1, kind: output, shape index: {}]  }
   0x1   :  { %v4_v0 = vld [vmem:[%s61_s0] sm:$0x3]  ;;  %s33_s0 = smov 127  }
   0x2   :  { %5 = vst [vmem:[#allocation0] sm:$0x3] %v4_v0 }
   0x9   :  { %v9_v1 = vld [vmem:[#allocation0] sm:$0x3]  }
   0xa   :  { %v21_v2 = vld [vmem:[#allocation0] sm:$0x3]   ;;  %10 = vrot.lane.b32.xlu0 %v9_v1, %s33_s0 }
   0xb   :  { %22 = vrot.lane.b32.xlu1 %v21_v2, %s34_s8  ;;  %v6_v3 = vld [vmem:[#allocation0] sm:$0x3]  }
   0xc   :  { %v15_v4 = vld [vmem:[#allocation0] sm:$0x3]   ;;  %8 = vst.msk [vmem:[%s62_s1] ss:$4 sm:$0x3] %vm7_vm0, %v6_v3  }
   0xe   :  { %16 = vrot.lane.b32.xlu0 %v15_v4, %s35_s11 }
  0x7c   :  { %v11_v5 = vpop.permute.xlu0 %10  }
  0x7d   :  { %v23_v6 = vpop.permute.xlu1 %22   ;;  %27 = vst.msk [vmem:[%s62_s1 + $0x1] ss:$4 sm:$0x3] %vm7_vm0, %v11_v5  }
  0x7e   :  { %29 = vst.msk [vmem:[%s62_s1 + $0x3] ss:$4 sm:$0x3] %vm7_vm0, %v23_v6  }
  0x80   :  { %v17_v7 = vpop.permute.xlu0 %16  }
  0x81   :  { %28 = vst.msk [vmem:[%s62_s1 + $0x2] ss:$4 sm:$0x3] %vm7_vm0, %v17_v7  }

// kernel: tile.18
= control target key start
LH: loop header
LB: loop body
LE: loop exit
PB: predicated region body
PF: predicated region fallthrough
CT: control target
= control target key end

     0   :  { %s22_s0 = inlined_call_operand.vmem [shape: f32[4], index: 0, kind: input, shape index: {}]   ;;  %s23_s1 = inlined_call_operand.vmem [shape: f32[2,4], index: 1, kind: output, shape index: {}]  }
   0x1   :  { %v4_v0 = vld [vmem:[%s22_s0] ss:$0 sm:$0xff] }
   0x2   :  { %5 = vst [vmem:[%s23_s1] sm:$0x3] %v4_v0 }

// kernel: actnorm_forward.1
= control target key start
LH: loop header
LB: loop body
LE: loop exit
PB: predicated region body
PF: predicated region fallthrough
CT: control target
= control target key end

     0   :  { %v40_v0 = vmov 0   ;;  %s79_s2 = inlined_call_operand.vmem [shape: f32[8,1], index: 2, kind: input, shape index: {}]   ;;  %s80_s1 = inlined_call_operand.vmem [shape: f32[8,1], index: 1, kind: input, shape index: {}]   ;;  %s81_s0 = inlined_call_operand.vmem [shape: f32[8,256], index: 0, kind: input, shape index: {}]   ;;  %s82_s3 = inlined_call_operand.vmem [shape: f32[8,256], index: 3, kind: output, shape index: {}]  }
   0x1   :  { %39 = vset.pattern.permute.xlu0 %v40_v0  ;;  %v17_v1 = vld [vmem:[%s79_s2] sm:$0xff]  ;;  %v16_v5 = vld [vmem:[%s81_s0 + $0x8] sm:$0xff] }
   0x2   :  { %20 = vperm.xlu0 %39, %v17_v1   ;;  %v14_v2 = vld [vmem:[%s80_s1] sm:$0xff] }
   0x3   :  { %v15_v4 = vld [vmem:[%s81_s0] sm:$0xff] }
   0x6   :  { %27 = vperm.xlu0 %39, %v14_v2  }
  0x81   :  { %v21_v3 = vpop.permute.xlu0 %20 }
  0x82   :  { %v23_v6 = vadd.f32 %v21_v3, %v15_v4  ;;  %v24_v7 = vadd.f32 %v21_v3, %v16_v5 }
  0x85   :  { %v28_v8 = vpop.permute.xlu0 %27 }
  0x86   :  { %v30_v9 = vmul.f32 %v28_v8, %v23_v6  ;;  %v31_v10 = vmul.f32 %v28_v8, %v24_v7 }
  0x88   :  { %32 = vst [vmem:[%s82_s3] sm:$0xff] %v30_v9  ;;  %33 = vst [vmem:[%s82_s3 + $0x8] sm:$0xff] %v31_v10 }

</bundles_post_ra>
